<compile_context>
chip_gen: v6e
topology: v6e:2x2x1
jax: 0.10.0
libtpu: 0.0.40
codegen_flags: <defaults>
</compile_context>

<pallas_src>
from typing import NamedTuple

import jax
import jax.numpy as jnp
from jax.experimental import pallas as pl
from jax.experimental.pallas import tpu as pltpu


def _round_up(x, m):
    return (x + m - 1) // m * m


def _cdiv(a, b):
    return (a + b - 1) // b


# ---------------------------------------------------------------------------
# Kernel: one (tm, tn) output tile; K reduced along the innermost grid axis.
# ---------------------------------------------------------------------------
def _proj_head_kernel(x_ref, w_ref, b_ref, o_ref, acc_ref):
    # x_ref: (tm, tk), w_ref: (tk, tn), b_ref: (1, tn) f32,
    # o_ref: (tm, tn), acc_ref: (tm, tn) f32 scratch (resident across K).
    k = pl.program_id(2)

    @pl.when(k == 0)
    def _():
        acc_ref[...] = jnp.zeros_like(acc_ref)

    acc_ref[...] += jnp.dot(
        x_ref[...], w_ref[...], preferred_element_type=jnp.float32
    )

    @pl.when(k == pl.num_programs(2) - 1)
    def _():
        # Epilogue: bias broadcast + sigmoid exactly once per output tile (EUP).
        out = acc_ref[...] + b_ref[...]
        o_ref[...] = jax.nn.sigmoid(out).astype(o_ref.dtype)


# ---------------------------------------------------------------------------
# One-time parameter preparation (call once, cache outside the step function).
# ---------------------------------------------------------------------------
class ProjectionHeadParams(NamedTuple):
    w: jax.Array   # (Kp, Np) transposed, cast, padded weight
    b: jax.Array   # (1, Np) float32 bias (padded)
    K: int
    N: int
    Kp: int
    Np: int
    tk: int
    tn: int


_TK_MAX = 2048   # deep K tile -> fewer accumulator read-modify-writes per FLOP
_TN_MAX = 512


def prepare_projection_head_params(weight, bias, *, compute_dtype=jnp.bfloat16):
    """Transpose / cast / pad the Linear parameters once.

    weight: (N, K) PyTorch nn.Linear layout; bias: (N,).
    compute_dtype: MXU operand dtype.  bf16 (default) halves weight HBM traffic
    and is MXU-native on v5e/v6e/v7x; pass jnp.float32 for exact PyTorch
    numerics.  Accumulation and the sigmoid epilogue are always f32.
    """
    N, K = weight.shape
    assert bias.shape == (N,)

    # ---- N tiling: 128-aligned (native v5e MXU; fine on v6e/v7x), minimal pad.
    if N <= 128:
        tn, Np = N, N                         # tiny head: full-N tile
    else:
        cands = range(128, min(_TN_MAX, _round_up(N, 128)) + 1, 128)
        tn = max(cands, key=lambda t: (-(_round_up(N, t) - N), t))
        # v7x megacore: guarantee >= 2 parallel N tiles so both TensorCores get
        # work even when B is small (harmless on single-TC v5e/v6e).
        if _round_up(N, tn) // tn < 2:
            tn = max(128, (_round_up(N, 128) // 2) // 128 * 128)
        Np = _round_up(N, tn)

    # ---- K tiling: full K in one step when it fits (no K padding, no extra
    # zero copy); otherwise a 256-multiple tile <= 2048 minimizing padding.
    if K <= _TK_MAX:
        tk, Kp = K, K
    else:
        cands = range(256, _TK_MAX + 1, 256)
        tk = max(cands, key=lambda t: (-(_round_up(K, t) - K), t))
        Kp = _round_up(K, tk)

    # Transpose to MXU-friendly (K, N), cast, and zero-pad ONCE.
    w_t = weight.T.astype(compute_dtype)
    if Kp != K or Np != N:
        w_t = jnp.pad(w_t, ((0, Kp - K), (0, Np - N)))

    b_p = bias if Np == N else jnp.pad(bias, (0, Np - N))
    b_p = b_p.reshape(1, Np).astype(jnp.float32)

    return ProjectionHeadParams(w=w_t, b=b_p, K=K, N=N, Kp=Kp, Np=Np, tk=tk, tn=tn)


# ---------------------------------------------------------------------------
# Forward: sigmoid(flatten(x) @ W^T + b)
# ---------------------------------------------------------------------------
def projection_head_forward(x, params: ProjectionHeadParams, *, tm_max=256):
    B = x.shape[0]
    x2d = x.reshape(B, -1)                        # torch .view(B, -1)
    K = x2d.shape[1]
    assert K == params.K, "flattened input_dims mismatch with prepared weight"

    out_dtype = x2d.dtype
    compute_dtype = params.w.dtype
    tn, tk, Np, Kp = params.tn, params.tk, params.Np, params.Kp

    # Adaptive tm: split B into near-equal tiles so Mp stays close to B.
    # 16-row alignment for 16-bit activations (two packed rows per sublane).
    align_m = 16 if jnp.dtype(compute_dtype).itemsize < 4 else 8
    n_m_tiles = _cdiv(B, tm_max)
    tm = min(tm_max, _round_up(_cdiv(B, n_m_tiles), align_m))
    Mp = _round_up(B, tm)

    # Single fused cast (+ optional pad) of the small activation slab.
    x_c = x2d.astype(compute_dtype)
    if Mp != B or Kp != K:
        x_c = jnp.pad(x_c, ((0, Mp - B), (0, Kp - K)))

    grid = (Mp // tm, Np // tn, Kp // tk)

    cbytes = jnp.dtype(compute_dtype).itemsize
    obytes = jnp.dtype(out_dtype).itemsize

    # Double-buffered VMEM footprint + f32 accumulator; cap limit at 48 MiB so
    # the same sizing is safe on v7x (64 MiB physical VMEM per TC).
    footprint = (2 * tm * tk * cbytes + 2 * tk * tn * cbytes
                 + 2 * tm * tn * obytes + tm * tn * 4 + 2 * tn * 4)
    vmem_limit = int(min(48 * 1024 * 1024, max(32 * 1024 * 1024, 2 * footprint)))

    cost = pl.CostEstimate(
        flops=2 * Mp * Np * Kp,
        bytes_accessed=(x_c.size * cbytes * grid[1]        # x re-streamed per N tile
                        + params.w.size * cbytes * grid[0]  # w re-streamed per M tile
                        + params.b.size * 4 * grid[0]
                        + Mp * Np * obytes),
        transcendentals=Mp * Np,
    )

    out = pl.pallas_call(
        _proj_head_kernel,
        out_shape=jax.ShapeDtypeStruct((Mp, Np), out_dtype),
        grid_spec=pltpu.PrefetchScalarGridSpec(
            num_scalar_prefetch=0,
            grid=grid,
            in_specs=[
                pl.BlockSpec((tm, tk), lambda i, j, k: (i, k)),   # activations
                pl.BlockSpec((tk, tn), lambda i, j, k: (k, j)),   # weight (K, N)
                pl.BlockSpec((1, tn), lambda i, j, k: (0, j)),    # bias
            ],
            out_specs=pl.BlockSpec((tm, tn), lambda i, j, k: (i, j)),
            scratch_shapes=[pltpu.VMEM((tm, tn), jnp.float32)],
        ),
        compiler_params=pltpu.CompilerParams(
            dimension_semantics=("parallel", "parallel", "arbitrary"),
            vmem_limit_bytes=vmem_limit,
        ),
        cost_estimate=cost,
    )(x_c, params.w, params.b)

    # Strip padding back to the logical (B, N) output.
    return out[:B, :params.N]


def _reference(x, weight, bias):
    B = x.shape[0]
    return jax.nn.sigmoid(x.reshape(B, -1) @ weight.T + bias)


if __name__ == "__main__":
    # Small shapes consistent with the module: x = (batch=2, channels=4, seq=16)
    # => flattened input_dims = 64, output_dims = 32.
    key = jax.random.PRNGKey(0)
    k_x, k_w, k_b = jax.random.split(key, 3)

    B, C, S = 2, 4, 16
    input_dims = C * S
    output_dims = 32

    x = jax.random.normal(k_x, (B, C, S), dtype=jnp.float32)

    # Deterministic param init mimicking nn.Linear default (uniform +-1/sqrt(in)).
    bound = 1.0 / (input_dims ** 0.5)
    weight = jax.random.uniform(k_w, (output_dims, input_dims),
                                minval=-bound, maxval=bound, dtype=jnp.float32)
    bias = jax.random.uniform(k_b, (output_dims,),
                              minval=-bound, maxval=bound, dtype=jnp.float32)

    ref = _reference(x, weight, bias)

    # f32 path: matches the PyTorch reference numerics tightly.
    params_f32 = prepare_projection_head_params(weight, bias,
                                                compute_dtype=jnp.float32)
    out_f32 = projection_head_forward(x, params_f32)
    jax.block_until_ready(out_f32)
    assert out_f32.shape == (B, output_dims)
    assert jnp.allclose(out_f32, ref, atol=1e-5, rtol=1e-5)

    # bf16-weight default path (recommended for the mem-bound regime);
    # reduced precision => looser tolerance vs the f32 reference.
    params_bf16 = prepare_projection_head_params(weight, bias)
    out_bf16 = projection_head_forward(x, params_bf16)
    jax.block_until_ready(out_bf16)
    assert out_bf16.shape == (B, output_dims)
    assert jnp.allclose(out_bf16, ref, atol=2e-2, rtol=2e-2)

    print("KERNEL_OK")
</pallas_src>

<mosaic_0001>
module attributes {stable_mosaic.version = 11 : i64} {
  func.func @_proj_head_kernel(%arg0: i32, %arg1: i32, %arg2: i32, %arg3: memref<8x64xf32, #tpu.memory_space<vmem>>, %arg4: memref<64x32xf32, #tpu.memory_space<vmem>>, %arg5: memref<1x32xf32, #tpu.memory_space<vmem>>, %arg6: memref<8x32xf32, #tpu.memory_space<vmem>>, %arg7: memref<8x32xf32, #tpu.memory_space<vmem>>) attributes {dimension_semantics = [#tpu.dimension_semantics<parallel>, #tpu.dimension_semantics<parallel>, #tpu.dimension_semantics<arbitrary>], iteration_bounds = array<i64: 1, 1, 1>, scalar_prefetch = 0 : i64, scratch_operands = 1 : i64, tpu.core_type = #tpu.core_type<tc>, window_params = [{transform_indices = @transform_0, window_bounds = array<i64: 8, 64>}, {transform_indices = @transform_1, window_bounds = array<i64: 64, 32>}, {transform_indices = @transform_2, window_bounds = array<i64: 1, 32>}, {transform_indices = @transform_3, window_bounds = array<i64: 8, 32>}]} {
    %c0_i32 = arith.constant 0 : i32
    %0 = arith.cmpi eq, %arg2, %c0_i32 : i32
    %1 = arith.extui %0 : i1 to i32
    %c0_i32_0 = arith.constant 0 : i32
    %2 = arith.cmpi ne, %1, %c0_i32_0 : i32
    scf.if %2 {
      %cst_10 = arith.constant 0.000000e+00 : f32
      %12 = vector.broadcast %cst_10 : f32 to vector<8x32xf32>
      %c0_11 = arith.constant 0 : index
      %c0_12 = arith.constant 0 : index
      %13 = vector.load %arg7[%c0_11, %c0_12] : memref<8x32xf32, #tpu.memory_space<vmem>>, vector<8x32xf32>
      tpu.vector_store %arg7[%c0_11, %c0_12], %12 {strides = array<i32>} : memref<8x32xf32, #tpu.memory_space<vmem>>, vector<8x32xf32>,
    } else {
    }
    %c0 = arith.constant 0 : index
    %c0_1 = arith.constant 0 : index
    %3 = vector.load %arg7[%c0, %c0_1] : memref<8x32xf32, #tpu.memory_space<vmem>>, vector<8x32xf32>
    %c0_2 = arith.constant 0 : index
    %c0_3 = arith.constant 0 : index
    %4 = vector.load %arg3[%c0_2, %c0_3] : memref<8x64xf32, #tpu.memory_space<vmem>>, vector<8x64xf32>
    %c0_4 = arith.constant 0 : index
    %c0_5 = arith.constant 0 : index
    %5 = vector.load %arg4[%c0_4, %c0_5] : memref<64x32xf32, #tpu.memory_space<vmem>>, vector<64x32xf32>
    %cst = arith.constant dense<0.000000e+00> : vector<8x32xf32>
    %6 = tpu.matmul %4, %5, %cst {dimension_numbers = #tpu.dot_dimension_numbers<[1], [0], [0], [1], [0, 0, 1, 1], [], []>} : vector<8x64xf32>, vector<64x32xf32>, vector<8x32xf32> -> vector<8x32xf32>
    %7 = arith.addf %3, %6 : vector<8x32xf32>
    %c0_6 = arith.constant 0 : index
    %c0_7 = arith.constant 0 : index
    %8 = vector.load %arg7[%c0_6, %c0_7] : memref<8x32xf32, #tpu.memory_space<vmem>>, vector<8x32xf32>
    tpu.vector_store %arg7[%c0_6, %c0_7], %7 {strides = array<i32>} : memref<8x32xf32, #tpu.memory_space<vmem>>, vector<8x32xf32>,
    %c0_i32_8 = arith.constant 0 : i32
    %9 = arith.cmpi eq, %arg2, %c0_i32_8 : i32
    %10 = arith.extui %9 : i1 to i32
    %c0_i32_9 = arith.constant 0 : i32
    %11 = arith.cmpi ne, %10, %c0_i32_9 : i32
    scf.if %11 {
      %c0_10 = arith.constant 0 : index
      %c0_11 = arith.constant 0 : index
      %12 = vector.load %arg7[%c0_10, %c0_11] : memref<8x32xf32, #tpu.memory_space<vmem>>, vector<8x32xf32>
      %c0_12 = arith.constant 0 : index
      %c0_13 = arith.constant 0 : index
      %13 = vector.load %arg5[%c0_12, %c0_13] : memref<1x32xf32, #tpu.memory_space<vmem>>, vector<1x32xf32>
      %14 = vector.broadcast %13 : vector<1x32xf32> to vector<8x32xf32>
      %15 = arith.addf %12, %14 : vector<8x32xf32>
      %16 = arith.negf %15 : vector<8x32xf32>
      %17 = math.exp %16 : vector<8x32xf32>
      %cst_14 = arith.constant 1.000000e+00 : f32
      %18 = vector.broadcast %cst_14 : f32 to vector<8x32xf32>
      %19 = arith.addf %18, %17 : vector<8x32xf32>
      %20 = arith.divf %18, %19 : vector<8x32xf32>
      %c0_15 = arith.constant 0 : index
      %c0_16 = arith.constant 0 : index
      %21 = vector.load %arg6[%c0_15, %c0_16] : memref<8x32xf32, #tpu.memory_space<vmem>>, vector<8x32xf32>
      tpu.vector_store %arg6[%c0_15, %c0_16], %20 {strides = array<i32>} : memref<8x32xf32, #tpu.memory_space<vmem>>, vector<8x32xf32>,
    } else {
    }
    return
  }
  func.func @transform_0(%arg0: i32, %arg1: i32, %arg2: i32) -> (i32, i32) {
    %c0_i32 = arith.constant 0 : i32
    return %arg0, %arg2 : i32, i32
  }
  func.func @transform_1(%arg0: i32, %arg1: i32, %arg2: i32) -> (i32, i32) {
    %c0_i32 = arith.constant 0 : i32
    return %arg2, %arg1 : i32, i32
  }
  func.func @transform_2(%arg0: i32, %arg1: i32, %arg2: i32) -> (i32, i32) {
    %c0_i32 = arith.constant 0 : i32
    %c0_i32_0 = arith.constant 0 : i32
    return %c0_i32, %arg1 : i32, i32
  }
  func.func @transform_3(%arg0: i32, %arg1: i32, %arg2: i32) -> (i32, i32) {
    %c0_i32 = arith.constant 0 : i32
    return %arg0, %arg1 : i32, i32
  }
}

</mosaic_0001>

<bundles_post_ra>
// kernel: tpu_custom_call.1
= control target key start
LH: loop header
LB: loop body
LE: loop exit
PB: predicated region body
PF: predicated region fallthrough
CT: control target
= control target key end

     0   :  { %v201_v1 = vmov 0.0   ;;  %vm202_vm0 = vmmov 0   ;;  %vm19_vm1 = vcmask 261120   ;;  %s260_s0 = inlined_call_operand.vmem [shape: f32[8,64], index: 0, kind: input, shape index: {}]   ;;  %s261_s1 = inlined_call_operand.vmem [shape: f32[64,32], index: 1, kind: input, shape index: {}]   ;;  %s262_s2 = inlined_call_operand.vmem [shape: f32[1,32], index: 2, kind: input, shape index: {}]   ;;  %s263_s3 = inlined_call_operand.hbm [shape: f32[8,32], index: 3, kind: output, shape index: {}]  }
   0x1   :  { %v30_v0 = vld [vmem:[%s261_s1 + $0x38] sm:$0xff]  ;;  %153 = vmatprep.subr.mxu0 %v201_v1  ;;  %v29_v2 = vld [vmem:[%s261_s1 + $0x30] sm:$0xff]  ;;  %169 = vmatprep.mubr.msk.f32.mxu0 %vm202_vm0, %v201_v1  ;;  %20 = vst.msk [vmem:[#allocation2] sm:$0xff] %vm19_vm1, %v201_v1  ;;  %v28_v3 = vld [vmem:[%s261_s1 + $0x28] sm:$0xff] }
   0x2   :  { %154 = vmatpush3.msra.mxu0 %v30_v0 }
   0x3   :  { %155 = vmatprep.subr.mxu0 %v201_v1 }
   0x4   :  { %8 = vsyncpa [#allocation4], 0  ;;  %156 = vmatpush3.msra.mxu0 %v29_v2  ;;  %v27_v4 = vld [vmem:[%s261_s1 + $0x20] sm:$0xff]  ;;  %v26_v5 = vld [vmem:[%s261_s1 + $0x18] sm:$0xff]  ;;  %vm31_vm2 = vcmask 523264  }
   0x5   :  { %157 = vmatprep.subr.mxu0 %v201_v1  ;;  %v25_v6 = vld [vmem:[%s261_s1 + $0x10] sm:$0xff]  ;;  %v24_v7 = vld [vmem:[%s261_s1 + $0x8] sm:$0xff]  ;;  %v23_v8 = vld [vmem:[%s261_s1] sm:$0xff] }
   0x6   :  { %158 = vmatpush3.msra.mxu0 %v28_v3  ;;  %v22_v9 = vld [vmem:[%s260_s0] sm:$0xff]  ;;  %s203_s0 = smov [#allocation3]  }
   0x7   :  { %159 = vmatprep.subr.mxu0 %v201_v1  ;;  %v142_v14 = vld [vmem:[%s262_s2] ss:$0 sm:$0xff]  ;;  %s133_s1 = sshll.u32 %s203_s0, 4  ;;  %s134_s1 = int_to_ptr.vmem [resolvable:$true] %s133_s1 }
   0x8   :  { %160 = vmatpush3.msra.mxu0 %v27_v4  ;;  %v21_v10 = vld [vmem:[#allocation2] sm:$0xff]  ;;  %s179_s5 = scalar_lea.vmem %s134_s1, 128  ;;  %p184_p1 = scmp.lt.s32.totalorder %s134_s1, %s134_s1 }
   0x9   :  { %161 = vmatprep.subr.mxu0 %v201_v1  ;;  %p180_p0 = scmp.ne.s32.totalorder %s134_s1, %s179_s5  ;;  %p185_p2 = scmp.lt.s32.totalorder %s179_s5, %s179_s5 }
   0xa   :  { %162 = vmatpush3.msra.mxu0 %v26_v5 }
   0xb   :  { %163 = vmatprep.subr.mxu0 %v201_v1  ;;  %p186_p3 = por %p185_p2, %p184_p1 }
   0xc   :  { %164 = vmatpush3.msra.mxu0 %v25_v6 }
   0xd   :  { %165 = vmatprep.subr.mxu0 %v201_v1  ;;  %p187_p4 = pnand %p186_p3, %p180_p0 }
   0xe   :  { %166 = vmatpush3.msra.mxu0 %v24_v7 }
   0xf   :  { %167 = vmatprep.subr.mxu0 %v201_v1 }
  0x10   :  { %168 = vmatpush3.msra.mxu0 %v23_v8 }
  0x11   :  { %170 = vmatmul.mubr.msk.f32.vlgmr.msra.gmra.mxu0 %vm31_vm2, %v22_v9 }
  0xd1   :  { %v101_v11 = vpop.f32.mrf.mxu0 }
  0xd2   :  { %v105_v12 = vadd.f32 %v101_v11, %v21_v10 }
  0xd3   :  { %v171_v13 = vpop.f32.mrf.mxu0 }
  0xd4   :  { %107 = vst.msk [vmem:[#allocation2] sm:$0xff] %vm19_vm1, %v105_v12 }
  0xdb   :  { %v111_v15 = vld [vmem:[#allocation2] sm:$0xff] }
  0xdc   :  { %v119_v16 = vadd.f32 %v142_v14, %v111_v15 }
  0xde   :  { %v143_v17 = vmul.f32 -1.442695, %v119_v16 }
  0xe0   :  { %175 = vpow2.f32 %v143_v17 }
  0xed   :  { %v176_v18 = vpop.eup %175 }
  0xee   :  { %v123_v19 = vadd.f32 1.0, %v176_v18 }
  0xf0   :  { %177 = vrcp.f32 %v123_v19 }
  0xfd   :  { %v178_v20 = vpop.eup %177 }
  0xfe   :  { %126 = vst.msk [vmem:[#allocation3] sm:$0xff] %vm19_vm1, %v178_v20 }
  0xff   :  { %190 = shalt.err (!%p187_p4)
}
 0x100   :  { %136 = dma.vmem_to_hbm [thread:$0]  %s134_s1, 128, %s263_s3, [#allocation4]  }
 0x101   :  { %199 = dma.done.wait [#allocation4], 128  }
 0x102   :  { %200 = vsyncadd [#allocation4], 4294967168 }
 0x103   :  { %140 = vsyncpa [#allocation4], 1 }

</bundles_post_ra>
